<compile_context>
chip_gen: v7x
topology: tpu7x:2x2x1
jax: 0.10.0
libtpu: 0.0.40
codegen_flags: <defaults>
</compile_context>

<pallas_src>
import jax
import jax.numpy as jnp
from jax.experimental import pallas as pl
from jax.experimental.pallas import tpu as pltpu

IN_FEATURES = 784
OUT_FEATURES = 10
N_PAD = 128  # lane-dense width for the resident folded weight (MXU-friendly)


def _round_up(x, m):
    return ((x + m - 1) // m) * m


def _cdiv(a, b):
    return (a + b - 1) // b


def mnist_kernel(x_ref, wc_ref, bc_ref, o_ref):
    # x_ref : (TB, 784)   f32   (streamed from HBM; cast to bf16 in-kernel)
    # wc_ref: (784, 128)  bf16  (folded W1^T @ W2^T, zero-padded cols 10..127; resident)
    # bc_ref: (1, 10)     f32   (folded bias; resident)
    # o_ref : (TB, 10)    f32
    x_bf16 = x_ref[...].astype(jnp.bfloat16)          # VPU cast, hidden under x DMA
    z = jnp.dot(x_bf16, wc_ref[...],
                preferred_element_type=jnp.float32)    # (TB, 128) f32 accum on MXU
    z10 = z[:, :OUT_FEATURES] + bc_ref[...]            # epilogue on the 10 real lanes only
    # sigmoid: exp + approximate reciprocal both go to the EUP slot
    o_ref[...] = pl.reciprocal(1.0 + jnp.exp(-z10), approx=True)


def fold_params(w1, b1, w2, b2):
    """One-time offline fold of the two Linear layers (PyTorch (out,in) layout)."""
    w1 = jnp.asarray(w1, jnp.float32)   # (20, 784)
    b1 = jnp.asarray(b1, jnp.float32)   # (20,)
    w2 = jnp.asarray(w2, jnp.float32)   # (10, 20)
    b2 = jnp.asarray(b2, jnp.float32)   # (10,)

    wc = w1.T @ w2.T                    # (784, 10)  -- exact fold (no nonlinearity between)
    bc = b1 @ w2.T + b2                 # (10,)

    wc_pad = jnp.zeros((IN_FEATURES, N_PAD), jnp.float32).at[:, :OUT_FEATURES].set(wc)
    bc_row = bc.reshape(1, OUT_FEATURES)
    return wc_pad.astype(jnp.bfloat16), bc_row  # weight bf16 (resident), bias f32


def mnist_net(x_nchw, wc_bf16, bc_f32, *, tb=2048):
    """Forward pass. x_nchw: (B, 1, 28, 28) f32; returns (B, 10) f32."""
    B = x_nchw.shape[0]
    x = x_nchw.reshape(B, IN_FEATURES)  # == torch .view(-1, 784); stays f32 (no wrapper cast)

    # Adaptive batch tile: spread B over the number of steps a tb-sized tile would
    # take, rounded to 8 sublanes, so padding is < 8 rows (usually zero).
    n_steps = max(1, _cdiv(B, tb))
    TB = _round_up(_cdiv(B, n_steps), 8)
    Bp = _round_up(B, TB)
    if Bp != B:
        x = jnp.pad(x, ((0, Bp - B), (0, 0)))

    cost = pl.CostEstimate(
        flops=2 * Bp * IN_FEATURES * N_PAD,
        transcendentals=Bp * OUT_FEATURES,
        bytes_accessed=Bp * (IN_FEATURES * 4 + OUT_FEATURES * 4)
        + IN_FEATURES * N_PAD * 2 + OUT_FEATURES * 4,
    )

    out = pl.pallas_call(
        mnist_kernel,
        out_shape=jax.ShapeDtypeStruct((Bp, OUT_FEATURES), jnp.float32),
        grid_spec=pltpu.PrefetchScalarGridSpec(
            num_scalar_prefetch=0,
            grid=(Bp // TB,),
            in_specs=[
                pl.BlockSpec((TB, IN_FEATURES), lambda i: (i, 0)),      # stream x (f32)
                pl.BlockSpec((IN_FEATURES, N_PAD), lambda i: (0, 0)),   # resident folded W
                pl.BlockSpec((1, OUT_FEATURES), lambda i: (0, 0)),      # resident folded b
            ],
            out_specs=pl.BlockSpec((TB, OUT_FEATURES), lambda i: (i, 0)),
        ),
        compiler_params=pltpu.CompilerParams(
            dimension_semantics=("parallel",),       # megacore sharding on v7x
            vmem_limit_bytes=32 * 1024 * 1024,       # TB=2048 f32 x double-buffers ~12.8 MiB
        ),
        cost_estimate=cost,
    )(x, wc_bf16, bc_f32)

    return out[:B]


if __name__ == "__main__":
    key = jax.random.PRNGKey(0)
    k_x, k_w1, k_b1, k_w2, k_b2 = jax.random.split(key, 5)

    B = 8
    # Deterministic synthetic parameters (PyTorch Linear shapes: (out, in)).
    x = jax.random.normal(k_x, (B, 1, 28, 28), dtype=jnp.float32)
    w1 = jax.random.normal(k_w1, (20, 784), dtype=jnp.float32) * 0.05
    b1 = jax.random.normal(k_b1, (20,), dtype=jnp.float32) * 0.05
    w2 = jax.random.normal(k_w2, (10, 20), dtype=jnp.float32) * 0.05
    b2 = jax.random.normal(k_b2, (10,), dtype=jnp.float32) * 0.05

    # Fold / pad / cast the weights ONCE (outside the per-call path).
    wc_bf16, bc_f32 = fold_params(w1, b1, w2, b2)
    wc_bf16, bc_f32 = jax.block_until_ready((wc_bf16, bc_f32))

    out = mnist_net(x, wc_bf16, bc_f32)
    out = jax.block_until_ready(out)

    # Reference check in plain f32 JAX (same math as the PyTorch module).
    x_flat = x.reshape(B, 784)
    ref = jax.nn.sigmoid((x_flat @ w1.T + b1) @ w2.T + b2)
    assert out.shape == (B, 10)
    # bf16 matmul inputs + approx reciprocal -> slightly looser tolerance than pure f32.
    assert jnp.allclose(out, ref, atol=2e-2, rtol=2e-2), float(jnp.max(jnp.abs(out - ref)))

    print("KERNEL_OK")
</pallas_src>

<mosaic_0001>
module attributes {stable_mosaic.version = 11 : i64} {
  func.func @mnist_kernel(%arg0: i32, %arg1: memref<8x784xf32, #tpu.memory_space<vmem>>, %arg2: memref<784x128xbf16, #tpu.memory_space<vmem>>, %arg3: memref<1x10xf32, #tpu.memory_space<vmem>>, %arg4: memref<8x10xf32, #tpu.memory_space<vmem>>) attributes {dimension_semantics = [#tpu.dimension_semantics<parallel>], iteration_bounds = array<i64: 1>, scalar_prefetch = 0 : i64, scratch_operands = 0 : i64, tpu.core_type = #tpu.core_type<tc>, window_params = [{transform_indices = @transform_0, window_bounds = array<i64: 8, 784>}, {pipeline_mode = #tpu.pipeline_mode<synchronous>, transform_indices = @transform_1, window_bounds = array<i64: 784, 128>}, {pipeline_mode = #tpu.pipeline_mode<synchronous>, transform_indices = @transform_2, window_bounds = array<i64: 1, 10>}, {transform_indices = @transform_3, window_bounds = array<i64: 8, 10>}]} {
    %c0 = arith.constant 0 : index
    %c0_0 = arith.constant 0 : index
    %0 = vector.load %arg1[%c0, %c0_0] : memref<8x784xf32, #tpu.memory_space<vmem>>, vector<8x784xf32>
    %1 = arith.truncf %0 : vector<8x784xf32> to vector<8x784xbf16>
    %c0_1 = arith.constant 0 : index
    %c0_2 = arith.constant 0 : index
    %2 = vector.load %arg2[%c0_1, %c0_2] : memref<784x128xbf16, #tpu.memory_space<vmem>>, vector<784x128xbf16>
    %cst = arith.constant dense<0.000000e+00> : vector<8x128xf32>
    %3 = tpu.matmul %1, %2, %cst {dimension_numbers = #tpu.dot_dimension_numbers<[1], [0], [0], [1], [0, 0, 1, 1], [], []>} : vector<8x784xbf16>, vector<784x128xbf16>, vector<8x128xf32> -> vector<8x128xf32>
    %4 = vector.extract_strided_slice %3 {offsets = [0, 0], sizes = [8, 10], strides = [1, 1]} : vector<8x128xf32> to vector<8x10xf32>
    %c0_3 = arith.constant 0 : index
    %c0_4 = arith.constant 0 : index
    %5 = vector.load %arg3[%c0_3, %c0_4] : memref<1x10xf32, #tpu.memory_space<vmem>>, vector<1x10xf32>
    %6 = vector.broadcast %5 : vector<1x10xf32> to vector<8x10xf32>
    %7 = arith.addf %4, %6 : vector<8x10xf32>
    %cst_5 = arith.constant 0.000000e+00 : f32
    %8 = vector.broadcast %cst_5 : f32 to vector<8x10xf32>
    %9 = arith.subf %8, %7 : vector<8x10xf32>
    %10 = math.exp %9 : vector<8x10xf32>
    %cst_6 = arith.constant 1.000000e+00 : f32
    %11 = vector.broadcast %cst_6 : f32 to vector<8x10xf32>
    %12 = arith.addf %11, %10 : vector<8x10xf32>
    %13 = tpu.reciprocal %12 {approx = true} : vector<8x10xf32> -> vector<8x10xf32>
    %c0_7 = arith.constant 0 : index
    %c0_8 = arith.constant 0 : index
    %14 = vector.load %arg4[%c0_7, %c0_8] : memref<8x10xf32, #tpu.memory_space<vmem>>, vector<8x10xf32>
    tpu.vector_store %arg4[%c0_7, %c0_8], %13 {strides = array<i32>} : memref<8x10xf32, #tpu.memory_space<vmem>>, vector<8x10xf32>,
    return
  }
  func.func @transform_0(%arg0: i32) -> (i32, i32) {
    %c0_i32 = arith.constant 0 : i32
    %c0_i32_0 = arith.constant 0 : i32
    return %arg0, %c0_i32 : i32, i32
  }
  func.func @transform_1(%arg0: i32) -> (i32, i32) {
    %c0_i32 = arith.constant 0 : i32
    %c0_i32_0 = arith.constant 0 : i32
    %c0_i32_1 = arith.constant 0 : i32
    return %c0_i32, %c0_i32_0 : i32, i32
  }
  func.func @transform_2(%arg0: i32) -> (i32, i32) {
    %c0_i32 = arith.constant 0 : i32
    %c0_i32_0 = arith.constant 0 : i32
    %c0_i32_1 = arith.constant 0 : i32
    return %c0_i32, %c0_i32_0 : i32, i32
  }
  func.func @transform_3(%arg0: i32) -> (i32, i32) {
    %c0_i32 = arith.constant 0 : i32
    %c0_i32_0 = arith.constant 0 : i32
    return %arg0, %c0_i32 : i32, i32
  }
}

</mosaic_0001>

<bundles_post_ra>
// kernel: tpu_custom_call.1
= control target key start
LH: loop header
LB: loop body
LE: loop exit
PB: predicated region body
PF: predicated region fallthrough
CT: control target
= control target key end

     0   :  { %8 = vsyncpa [#allocation3], 0  ;;  %s973_s0 = inlined_call_operand.hbm [shape: f32[8,784], index: 0, kind: input, shape index: {}]   ;;  %s974_s1 = inlined_call_operand.hbm [shape: bf16[784,128], index: 1, kind: input, shape index: {}]   ;;  %s975_s2 = inlined_call_operand.vmem [shape: f32[1,10], index: 2, kind: input, shape index: {}]   ;;  %s976_s3 = inlined_call_operand.hbm [shape: f32[8,10], index: 3, kind: output, shape index: {}]  }
   0x1   :  { %9 = vsyncpa [#allocation6], 0 }
   0x2   :  { %10 = vsyncpa [#allocation4], 0  ;;  %s900_s12 = smov [#allocation2]   ;;  %s901_s14 = smov [#allocation5]  }
   0x3   :  { %s17_s13 = sshll.u32 %s900_s12, 4  ;;  %s26_s15 = sshll.u32 %s901_s14, 4  ;;  %s18_s13 = int_to_ptr.vmem [resolvable:$true] %s17_s13  ;;  %s927_s15 = int_to_ptr.vmem [resolvable:$true] %s26_s15 }
   0x4   :  { %s828_s18 = scalar_lea.hbm %s973_s0, 896 }
   0x5   :  { %p829_p0 = scmp.ne.s32.totalorder %s973_s0, %s828_s18  ;;  %p832_p1 = scmp.lt.u32.totalorder %s828_s18, %s973_s0 }
   0x7   :  { %p834_p2 = pnand %p832_p1, %p829_p0 }
   0x9   :  { %837 = shalt.err (!%p834_p2)
}
   0xa   :  { %s838_s23 = scalar_lea.vmem %s18_s13, 896  ;;  %p843_p4 = scmp.lt.s32.totalorder %s18_s13, %s18_s13 }
   0xb   :  { %p839_p3 = scmp.ne.s32.totalorder %s18_s13, %s838_s23  ;;  %p844_p5 = scmp.lt.s32.totalorder %s838_s23, %s838_s23 }
   0xd   :  { %p845_p6 = por %p844_p5, %p843_p4 }
   0xf   :  { %p846_p7 = pnand %p845_p6, %p839_p3 }
  0x11   :  { %849 = shalt.err (!%p846_p7)
}
  0x12   :  { %20 = dma.hbm_to_vmem [thread:$0]  %s973_s0, 896, %s18_s13, [#allocation3]  }
  0x13   :  { %s850_s28 = scalar_lea.hbm %s974_s1, 6272 }
  0x14   :  { %p851_p8 = scmp.ne.s32.totalorder %s974_s1, %s850_s28  ;;  %p854_p9 = scmp.lt.u32.totalorder %s850_s28, %s974_s1 }
  0x16   :  { %p856_p10 = pnand %p854_p9, %p851_p8 }
  0x18   :  { %859 = shalt.err (!%p856_p10)
}
  0x19   :  { %s860_s6 = scalar_lea.vmem %s927_s15, 6272  ;;  %p865_p12 = scmp.lt.s32.totalorder %s927_s15, %s927_s15 }
  0x1a   :  { %p861_p11 = scmp.ne.s32.totalorder %s927_s15, %s860_s6  ;;  %p866_p13 = scmp.lt.s32.totalorder %s860_s6, %s860_s6 }
  0x1c   :  { %p867_p0 = por %p866_p13, %p865_p12 }
  0x1e   :  { %p868_p1 = pnand %p867_p0, %p861_p11 }
  0x20   :  { %871 = shalt.err (!%p868_p1)
}
  0x21   :  { %s902_s0 = smov 64   ;;  %s903_s7 = smov 4  }
  0x22   :  { %32 = dma.hbm_to_vmem [thread:$0]  %s974_s1, 6272, %s927_s15, [#allocation6], %s902_s0, %s902_s0, %s903_s7  }
  0x23   :  { %894 = dma.done.wait [#allocation3], 896  }
  0x24   :  { %895 = vsyncadd [#allocation3], 4294966400 }
  0x25   :  { %896 = dma.done.wait [#allocation6], 6272  }
  0x26   :  { %897 = vsyncadd [#allocation6], 4294961024  ;;  %v775_v0 = vld [vmem:[#allocation5 + $0x40] sm:$0xff]   ;;  %v779_v4 = vld [vmem:[#allocation5 + $0x48] sm:$0xff]   ;;  %v904_v41 = vmov 0.0   ;;  %vm905_vm0 = vmmov 0  }
  0x27   :  { %v776_v1 = vld [vmem:[#allocation5 + $0xc0] sm:$0xff]   ;;  %694 = vmatprep.subr.bf16.mxu0 %v775_v0  ;;  %v780_v5 = vld [vmem:[#allocation5 + $0xc8] sm:$0xff]   ;;  %v783_v8 = vld [vmem:[#allocation5 + $0x50] sm:$0xff]   ;;  %vm448_vm1 = vcmask 130048   ;;  %s906_s11 = smov [#allocation7]   ;;  %vm625_vm2 = vcmask 80896  }
  0x28   :  { %v777_v2 = vld [vmem:[#allocation5] sm:$0xff]   ;;  %716 = vmatprep.subr.bf16.mxu1 %v776_v1  ;;  %v781_v6 = vld [vmem:[#allocation5 + $0x8] sm:$0xff]   ;;  %v784_v9 = vld [vmem:[#allocation5 + $0xd0] sm:$0xff]   ;;  %s633_s12 = sshll.u32 %s906_s11, 4  ;;  %s634_s12 = int_to_ptr.vmem [resolvable:$true] %s633_s12 }
  0x29   :  { %v778_v3 = vld [vmem:[#allocation5 + $0x80] sm:$0xff]   ;;  %695 = vmatpush3.bf16.msra.mxu0 %v777_v2  ;;  %v782_v7 = vld [vmem:[#allocation5 + $0x88] sm:$0xff]   ;;  %v785_v10 = vld [vmem:[#allocation5 + $0x10] sm:$0xff]   ;;  %s872_s13 = scalar_lea.vmem %s634_s12, 128  ;;  %p877_p3 = scmp.lt.s32.totalorder %s634_s12, %s634_s12 }
  0x2a   :  { %717 = vmatpush3.bf16.msra.mxu1 %v778_v3  ;;  %696 = vmatprep.subr.bf16.mxu0 %v779_v4  ;;  %v786_v11 = vld [vmem:[#allocation5 + $0x90] sm:$0xff]   ;;  %v787_v12 = vld [vmem:[#allocation5 + $0x58] sm:$0xff]   ;;  %v791_v16 = vld [vmem:[#allocation5 + $0x60] sm:$0xff]   ;;  %p873_p2 = scmp.ne.s32.totalorder %s634_s12, %s872_s13  ;;  %p878_p4 = scmp.lt.s32.totalorder %s872_s13, %s872_s13 }
  0x2b   :  { %718 = vmatprep.subr.bf16.mxu1 %v780_v5  ;;  %v788_v13 = vld [vmem:[#allocation5 + $0xd8] sm:$0xff]   ;;  %v792_v17 = vld [vmem:[#allocation5 + $0xe0] sm:$0xff]   ;;  %v795_v20 = vld [vmem:[#allocation5 + $0x68] sm:$0xff]  }
  0x2c   :  { %v789_v14 = vld [vmem:[#allocation5 + $0x18] sm:$0xff]   ;;  %v793_v18 = vld [vmem:[#allocation5 + $0x20] sm:$0xff]   ;;  %v796_v21 = vld [vmem:[#allocation5 + $0xe8] sm:$0xff]   ;;  %p879_p5 = por %p878_p4, %p877_p3 }
  0x2d   :  { %697 = vmatpush3.bf16.msra.mxu0 %v781_v6  ;;  %v790_v15 = vld [vmem:[#allocation5 + $0x98] sm:$0xff]   ;;  %v794_v19 = vld [vmem:[#allocation5 + $0xa0] sm:$0xff]   ;;  %v797_v22 = vld [vmem:[#allocation5 + $0x28] sm:$0xff]  }
  0x2e   :  { %719 = vmatpush3.bf16.msra.mxu1 %v782_v7  ;;  %698 = vmatprep.subr.bf16.mxu0 %v783_v8  ;;  %v798_v23 = vld [vmem:[#allocation5 + $0xa8] sm:$0xff]   ;;  %v799_v24 = vld [vmem:[#allocation5 + $0x70] sm:$0xff]   ;;  %v803_v28 = vld [vmem:[#allocation5 + $0x78] sm:$0xff]   ;;  %p880_p6 = pnand %p879_p5, %p873_p2 }
  0x2f   :  { %720 = vmatprep.subr.bf16.mxu1 %v784_v9  ;;  %v800_v25 = vld [vmem:[#allocation5 + $0xf0] sm:$0xff]   ;;  %v804_v29 = vld [vmem:[#allocation5 + $0xf8] sm:$0xff]   ;;  %v45_v33 = vld [vmem:[#allocation2 + $0x18] sm:$0xff] }
  0x30   :  { %v801_v26 = vld [vmem:[#allocation5 + $0x30] sm:$0xff]   ;;  %v805_v30 = vld [vmem:[#allocation5 + $0x38] sm:$0xff]   ;;  %v42_v34 = vld [vmem:[#allocation2] sm:$0xff]  ;;  %v52_v36 = vpack.c.bf16 %v45_v33, %v45_v33 }
  0x31   :  { %699 = vmatpush3.bf16.msra.mxu0 %v785_v10  ;;  %v802_v27 = vld [vmem:[#allocation5 + $0xb0] sm:$0xff]   ;;  %v806_v31 = vld [vmem:[#allocation5 + $0xb8] sm:$0xff]   ;;  %v49_v37 = vpack.c.bf16 %v42_v34, %v42_v34  ;;  %v807_v40 = vld [vmem:[#allocation5 + $0x140] sm:$0xff]  }
  0x32   :  { %721 = vmatpush3.bf16.msra.mxu1 %v786_v11  ;;  %700 = vmatprep.subr.bf16.mxu0 %v787_v12  ;;  %v43_v32 = vld [vmem:[#allocation2 + $0x8] sm:$0xff]  ;;  %v44_v38 = vld [vmem:[#allocation2 + $0x10] sm:$0xff]  ;;  %v808_v42 = vld [vmem:[#allocation5 + $0x100] sm:$0xff]  }
  0x33   :  { %722 = vmatprep.subr.bf16.mxu1 %v788_v13  ;;  %v50_v35 = vpack.c.bf16 %v43_v32, %v43_v32  ;;  %v51_v39 = vpack.c.bf16 %v44_v38, %v44_v38  ;;  %524 = vmatprep.mubr.bf16.mxu1 %v52_v36  ;;  %v809_v43 = vld [vmem:[#allocation5 + $0x148] sm:$0xff]   ;;  %v811_v45 = vld [vmem:[#allocation5 + $0x150] sm:$0xff]   ;;  %v813_v47 = vld [vmem:[#allocation5 + $0x158] sm:$0xff]  }
  0x34   :  { %v810_v44 = vld [vmem:[#allocation5 + $0x108] sm:$0xff]   ;;  %v812_v46 = vld [vmem:[#allocation5 + $0x110] sm:$0xff]   ;;  %v814_v48 = vld [vmem:[#allocation5 + $0x118] sm:$0xff]  }
  0x35   :  { %701 = vmatpush3.bf16.msra.mxu0 %v789_v14  ;;  %484 = vmatprep.mubr.bf16.mxu0 %v50_v35  ;;  %v815_v49 = vld [vmem:[#allocation5 + $0x160] sm:$0xff]   ;;  %v47_v52 = vld [vmem:[#allocation2 + $0x28] sm:$0xff]  ;;  %v817_v53 = vld [vmem:[#allocation5 + $0x168] sm:$0xff]  }
  0x36   :  { %723 = vmatpush3.bf16.msra.mxu1 %v790_v15  ;;  %702 = vmatprep.subr.bf16.mxu0 %v791_v16  ;;  %v816_v50 = vld [vmem:[#allocation5 + $0x120] sm:$0xff]   ;;  %v54_v54 = vpack.c.bf16 %v47_v52, %v47_v52  ;;  %v48_v55 = vld [vmem:[#allocation2 + $0x30] sm:$0xff]  ;;  %v818_v57 = vld [vmem:[#allocation5 + $0x128] sm:$0xff]  }
  0x37   :  { %724 = vmatprep.subr.bf16.mxu1 %v792_v17  ;;  %v823_v51 = vld [vmem:[#allocation5 + $0x180] sm:$0xff]   ;;  %v55_v56 = vpack.c.bf16 %v48_v55, %v48_v55  ;;  %v819_v58 = vld [vmem:[#allocation5 + $0x170] sm:$0xff]   ;;  %v821_v60 = vld [vmem:[#allocation5 + $0x178] sm:$0xff]  }
  0x38   :  { %v820_v59 = vld [vmem:[#allocation5 + $0x130] sm:$0xff]   ;;  %v822_v61 = vld [vmem:[#allocation5 + $0x138] sm:$0xff]   ;;  %v46_v62 = vld [vmem:[#allocation2 + $0x20] sm:$0xff] }
  0x39   :  { %703 = vmatpush3.bf16.msra.mxu0 %v793_v18  ;;  %v53_v63 = vpack.c.bf16 %v46_v62, %v46_v62 }
  0x3a   :  { %725 = vmatpush3.bf16.msra.mxu1 %v794_v19  ;;  %704 = vmatprep.subr.bf16.mxu0 %v795_v20 }
  0x3b   :  { %726 = vmatprep.subr.bf16.mxu1 %v796_v21  ;;  %v693_v21 = vld [vmem:[%s975_s2] ss:$0 sm:$0xff] }
  0x3d   :  { %705 = vmatpush3.bf16.msra.mxu0 %v797_v22 }
  0x3e   :  { %727 = vmatpush3.bf16.msra.mxu1 %v798_v23  ;;  %706 = vmatprep.subr.bf16.mxu0 %v799_v24 }
  0x3f   :  { %728 = vmatprep.subr.bf16.mxu1 %v800_v25 }
  0x41   :  { %707 = vmatpush3.bf16.msra.mxu0 %v801_v26 }
  0x42   :  { %729 = vmatpush3.bf16.msra.mxu1 %v802_v27  ;;  %708 = vmatprep.subr.bf16.mxu0 %v803_v28 }
  0x43   :  { %730 = vmatprep.subr.bf16.mxu1 %v804_v29 }
  0x45   :  { %709 = vmatpush3.bf16.msra.mxu0 %v805_v30 }
  0x46   :  { %731 = vmatpush3.bf16.msra.mxu1 %v806_v31  ;;  %738 = vmatprep.subr.bf16.mxu0 %v807_v40 }
  0x47   :  { %762 = vmatprep.subr.bf16.mxu1 %v904_v41 }
  0x48   :  { %485 = vmatmul.mubr.bf16.vlgmr.msra.gmra.mrb[0].mxu0 %v49_v37 }
  0x49   :  { %525 = vmatmul.mubr.bf16.vlgmr.msra.gmra.mrb[0].mxu1 %v51_v39  ;;  %739 = vmatpush3.bf16.msra.mxu0 %v808_v42 }
  0x4a   :  { %764 = vmatprep.mubr.msk.bf16.mxu1 %vm905_vm0, %v904_v41  ;;  %740 = vmatprep.subr.bf16.mxu0 %v809_v43 }
  0x4b   :  { %763 = vmatpush3.bf16.msra.mxu1 %v823_v51  ;;  %564 = vmatprep.mubr.bf16.mxu0 %v54_v54 }
  0x4d   :  { %741 = vmatpush3.bf16.msra.mxu0 %v810_v44 }
  0x4e   :  { %742 = vmatprep.subr.bf16.mxu0 %v811_v45 }
  0x51   :  { %743 = vmatpush3.bf16.msra.mxu0 %v812_v46  ;;  %765 = vmatmul.mubr.msk.bf16.vlgmr.msra.gmra.mrb[4].mxu1 %vm448_vm1, %v55_v56 }
  0x52   :  { %744 = vmatprep.subr.bf16.mxu0 %v813_v47 }
  0x55   :  { %745 = vmatpush3.bf16.msra.mxu0 %v814_v48 }
  0x56   :  { %746 = vmatprep.subr.bf16.mxu0 %v815_v49 }
  0x59   :  { %747 = vmatpush3.bf16.msra.mxu0 %v816_v50 }
  0x5a   :  { %748 = vmatprep.subr.bf16.mxu0 %v817_v53 }
  0x5d   :  { %749 = vmatpush3.bf16.msra.mxu0 %v818_v57 }
  0x5e   :  { %750 = vmatprep.subr.bf16.mxu0 %v819_v58 }
  0x61   :  { %751 = vmatpush3.bf16.msra.mxu0 %v820_v59 }
  0x62   :  { %752 = vmatprep.subr.bf16.mxu0 %v821_v60 }
  0x65   :  { %753 = vmatpush3.bf16.msra.mxu0 %v822_v61 }
  0x68   :  { %565 = vmatmul.mubr.bf16.vlgmr.msra.gmra.mrb[4].mxu0 %v53_v63 }
 0x11b   :  { %v710_v0 = vpop.f32.mrb[0].mxu0 }
 0x11c   :  { %v732_v1 = vpop.f32.mrb[0].mxu1  ;;  %v711_v2 = vpop.f32.mrb[1].mxu0 }
 0x11d   :  { %v733_v3 = vpop.f32.mrb[1].mxu1  ;;  %v712_v4 = vadd.f32 %v711_v2, %v710_v0  ;;  %v713_v6 = vpop.f32.mrb[2].mxu0 }
 0x11e   :  { %v734_v5 = vadd.f32 %v733_v3, %v732_v1  ;;  %v735_v7 = vpop.f32.mrb[2].mxu1  ;;  %v714_v8 = vpop.f32.mrb[3].mxu0 }
 0x11f   :  { %v736_v9 = vpop.f32.mrb[3].mxu1 }
 0x120   :  { %v527_v10 = vadd.f32 %v734_v5, %v712_v4 }
 0x124   :  { %v606_v11 = vpop.f32.mrb[4].mxu1 }
 0x125   :  { %v766_v12 = vpop.f32.mrb[5].mxu1 }
 0x126   :  { %v609_v13 = vpop.f32.mrb[6].mxu1 }
 0x127   :  { %v767_v14 = vpop.f32.mrb[7].mxu1 }
 0x13b   :  { %v754_v15 = vpop.f32.mrb[4].mxu0 }
 0x13c   :  { %v755_v16 = vpop.f32.mrb[5].mxu0 }
 0x13d   :  { %v756_v17 = vadd.f32 %v755_v16, %v754_v15  ;;  %v757_v18 = vpop.f32.mrb[6].mxu0 }
 0x13e   :  { %v758_v19 = vpop.f32.mrb[7].mxu0 }
 0x13f   :  { %v567_v20 = vadd.f32 %v756_v17, %v527_v10 }
 0x141   :  { %v607_v22 = vadd.f32 %v606_v11, %v567_v20 }
 0x143   :  { %v619_v23 = vadd.f32 %v693_v21, %v607_v22 }
 0x145   :  { %v620_v24 = vsub.f32 0.0, %v619_v23 }
 0x147   :  { %v621_v25 = vmul.f32 1.442695, %v620_v24 }
 0x149   :  { %824 = vpow2.f32 %v621_v25 }
 0x153   :  { %v825_v26 = vpop.eup %824 }
 0x154   :  { %v623_v27 = vadd.f32 1.0, %v825_v26 }
 0x156   :  { %826 = vrcp.f32 %v623_v27 }
 0x160   :  { %v827_v28 = vpop.eup %826 }
 0x161   :  { %626 = vst.msk [vmem:[#allocation7] sm:$0xff] %vm625_vm2, %v827_v28 }
 0x162   :  { %883 = shalt.err (!%p880_p6)
}
 0x163   :  { %s884_s15 = scalar_lea.hbm %s976_s3, 128 }
 0x164   :  { %p885_p7 = scmp.ne.s32.totalorder %s976_s3, %s884_s15  ;;  %p888_p8 = scmp.lt.u32.totalorder %s884_s15, %s976_s3 }
 0x166   :  { %p890_p9 = pnand %p888_p8, %p885_p7 }
 0x168   :  { %893 = shalt.err (!%p890_p9)
}
 0x169   :  { %636 = dma.vmem_to_hbm [thread:$0]  %s634_s12, 128, %s976_s3, [#allocation4]  }
 0x16a   :  { %898 = dma.done.wait [#allocation4], 128  }
 0x16b   :  { %899 = vsyncadd [#allocation4], 4294967168 }
 0x16c   :  { %640 = vsyncpa [#allocation3], 1 }
 0x16d   :  { %641 = vsyncpa [#allocation6], 1 }
 0x16e   :  { %642 = vsyncpa [#allocation4], 1 }

</bundles_post_ra>
